<compile_context>
chip_gen: v5e
topology: v5e:2x2
jax: 0.10.0
libtpu: 0.0.40
codegen_flags: <defaults>
</compile_context>

<pallas_src>
import jax
import jax.numpy as jnp
from jax.experimental import pallas as pl
from jax.experimental.pallas import tpu as pltpu

EPS = 1e-5
C_OUT = 42
KSIZE = 3
K_COLS = KSIZE * KSIZE      # 9 im2col columns
K_PAD = 16                  # packed params rows / patches minor dim (sublane pad of 11)
C_PAD = 128                 # lane-dense padded channel dim
GAMMA_ROW = K_COLS          # row 9 of the packed params tile
BETA_ROW = K_COLS + 1       # row 10


def _make_convblock_kernel(m_valid: int):
    """Kernel factory closing over the number of valid (un-padded) rows."""
    inv_m = 1.0 / float(m_valid)

    def kernel(patches_ref, params_ref, o_ref):
        # patches: (M_pad, 16)   params: (16, 128)   o: (M_pad, 128)
        patches = patches_ref[...]
        params = params_ref[...]

        # Conv as im2col matmul, f32 accumulation.  Patch columns >= 9 are
        # zero, so the gamma/beta/zero rows of `params` contribute nothing.
        # No bias: it cancels exactly under training-mode BatchNorm.
        y = jnp.dot(patches, params, preferred_element_type=jnp.float32)

        # Training-mode BN statistics.  Padded patch rows are zero, hence
        # their conv rows are exactly zero and the plain sums over M_pad
        # already equal the valid-row sums; only the divisor uses m_valid.
        sum_y = jnp.sum(y, axis=0, keepdims=True)
        sum_y2 = jnp.sum(y * y, axis=0, keepdims=True)
        mean = sum_y * inv_m
        var = jnp.maximum(sum_y2 * inv_m - mean * mean, 0.0)

        gamma = params[GAMMA_ROW:GAMMA_ROW + 1, :]     # (1, 128)
        beta = params[BETA_ROW:BETA_ROW + 1, :]        # (1, 128)

        # Fold BN affine into a single per-channel scale/shift, then ReLU.
        # Padded channels have gamma == beta == 0 -> output exactly 0.
        scale = gamma * jax.lax.rsqrt(var + EPS)
        shift = beta - mean * scale
        o_ref[...] = jnp.maximum(y * scale + shift, 0.0)

    return kernel


def conv_block_forward(x, w, b, gamma, beta):
    """x: (N,1,H,W) f32, w: (42,1,3,3), b/gamma/beta: (42,) -> (N,42,H,W).

    `b` is accepted for parity with the PyTorch module but intentionally
    unused: the conv bias cancels exactly under training-mode BatchNorm.
    """
    del b
    N, C, H, W = x.shape
    assert C == 1

    # im2col: pad=1, 3x3 patches in (kh, kw) row-major order (matches the
    # flattening order of the PyTorch OIHW weight).  Kept in the XLA wrapper
    # where it fuses cleanly; the tiny odd-shaped board would only force
    # cross-lane relayouts in-kernel.
    xp = jnp.pad(x, ((0, 0), (0, 0), (1, 1), (1, 1)))
    cols = [
        xp[:, 0, kh:kh + H, kw:kw + W]
        for kh in range(KSIZE)
        for kw in range(KSIZE)
    ]
    M = N * H * W
    patches = jnp.stack(cols, axis=-1).reshape(M, K_COLS)

    # Sublane-align rows (zero pad rows -> zero conv rows) and pad the minor
    # dim 9 -> 16 with zero columns so it lines up with the packed params.
    M_pad = ((M + 7) // 8) * 8
    patches = jnp.pad(patches, ((0, M_pad - M), (0, K_PAD - K_COLS)))

    # Single packed parameter tile (one DMA instead of four):
    #   rows 0..8  : conv weight reshaped (42,9) -> (9,42), channel-padded
    #   row  9     : gamma,   row 10 : beta,   rows 11..15 : zero
    # Channels 42..127 are zero-padded (zero gamma/beta -> zero outputs).
    w_mat = w.reshape(C_OUT, K_COLS).T                       # (9, 42)
    params = jnp.zeros((K_PAD, C_PAD), jnp.float32)
    params = params.at[:K_COLS, :C_OUT].set(w_mat)
    params = params.at[GAMMA_ROW, :C_OUT].set(gamma)
    params = params.at[BETA_ROW, :C_OUT].set(beta)

    vmem = pl.BlockSpec(memory_space=pltpu.MemorySpace.VMEM)
    out = pl.pallas_call(
        _make_convblock_kernel(M),
        out_shape=jax.ShapeDtypeStruct((M_pad, C_PAD), jnp.float32),
        in_specs=[vmem, vmem],
        out_specs=vmem,
    )(patches, params)

    # Strip padding, (N*H*W, 42) -> NCHW.
    # TODO(synk): if the downstream consumer can take NHWC, drop this transpose.
    out = out[:M, :C_OUT]
    return out.reshape(N, H, W, C_OUT).transpose(0, 3, 1, 2)


# Jit the wrapper so the im2col prologue / epilogue fuse into few XLA ops.
conv_block_forward = jax.jit(conv_block_forward)


def _reference(x, w, b, gamma, beta):
    """Pure-JAX reference reproducing the PyTorch forward (training-mode BN)."""
    y = jax.lax.conv_general_dilated(
        x, w, window_strides=(1, 1), padding=((1, 1), (1, 1)),
        dimension_numbers=("NCHW", "OIHW", "NCHW"),
    ) + b.reshape(1, C_OUT, 1, 1)
    mean = y.mean(axis=(0, 2, 3), keepdims=True)
    var = ((y - mean) ** 2).mean(axis=(0, 2, 3), keepdims=True)
    y_norm = (y - mean) * jax.lax.rsqrt(var + EPS)
    return jnp.maximum(
        gamma.reshape(1, C_OUT, 1, 1) * y_norm + beta.reshape(1, C_OUT, 1, 1),
        0.0,
    )


if __name__ == "__main__":
    key = jax.random.PRNGKey(0)
    kx, kw, kb = jax.random.split(key, 3)

    # Connect-4 board: batch=2, 1 input channel, 6x7 spatial.
    x = jax.random.normal(kx, (2, 1, 6, 7), dtype=jnp.float32)

    # Deterministic synthetic parameters (shapes from the module __init__).
    w = jax.random.normal(kw, (C_OUT, 1, KSIZE, KSIZE), dtype=jnp.float32) * 0.1
    b = jax.random.normal(kb, (C_OUT,), dtype=jnp.float32) * 0.1
    gamma = jnp.ones((C_OUT,), dtype=jnp.float32)   # BatchNorm2d default weight
    beta = jnp.zeros((C_OUT,), dtype=jnp.float32)   # BatchNorm2d default bias

    out = conv_block_forward(x, w, b, gamma, beta)
    jax.block_until_ready(out)

    ref = _reference(x, w, b, gamma, beta)
    assert out.shape == (2, C_OUT, 6, 7)
    assert jnp.allclose(out, ref, atol=1e-4, rtol=1e-4)

    print("KERNEL_OK")
</pallas_src>

<mosaic_0001>
module attributes {stable_mosaic.version = 11 : i64} {
  func.func @kernel(%arg0: memref<88x16xf32, #tpu.memory_space<vmem>>, %arg1: memref<16x128xf32, #tpu.memory_space<vmem>>, %arg2: memref<88x128xf32, #tpu.memory_space<vmem>>) attributes {dimension_semantics = [], scalar_prefetch = 0 : i64, scratch_operands = 0 : i64, tpu.core_type = #tpu.core_type<tc>} {
    %c0 = arith.constant 0 : index
    %c0_0 = arith.constant 0 : index
    %0 = vector.load %arg0[%c0, %c0_0] : memref<88x16xf32, #tpu.memory_space<vmem>>, vector<88x16xf32>
    %c0_1 = arith.constant 0 : index
    %c0_2 = arith.constant 0 : index
    %1 = vector.load %arg1[%c0_1, %c0_2] : memref<16x128xf32, #tpu.memory_space<vmem>>, vector<16x128xf32>
    %cst = arith.constant dense<0.000000e+00> : vector<88x128xf32>
    %2 = tpu.matmul %0, %1, %cst {dimension_numbers = #tpu.dot_dimension_numbers<[1], [0], [0], [1], [0, 0, 1, 1], [], []>} : vector<88x16xf32>, vector<16x128xf32>, vector<88x128xf32> -> vector<88x128xf32>
    %cst_3 = arith.constant dense<0.000000e+00> : vector<128xf32>
    %3 = vector.multi_reduction <add>, %2, %cst_3 [0] : vector<88x128xf32> to vector<128xf32>
    %4 = vector.shape_cast %3 : vector<128xf32> to vector<1x128xf32>
    %5 = arith.mulf %2, %2 : vector<88x128xf32>
    %cst_4 = arith.constant dense<0.000000e+00> : vector<128xf32>
    %6 = vector.multi_reduction <add>, %5, %cst_4 [0] : vector<88x128xf32> to vector<128xf32>
    %7 = vector.shape_cast %6 : vector<128xf32> to vector<1x128xf32>
    %cst_5 = arith.constant 0.0119047621 : f32
    %8 = vector.broadcast %cst_5 : f32 to vector<1x128xf32>
    %9 = arith.mulf %4, %8 : vector<1x128xf32>
    %cst_6 = arith.constant 0.0119047621 : f32
    %10 = vector.broadcast %cst_6 : f32 to vector<1x128xf32>
    %11 = arith.mulf %7, %10 : vector<1x128xf32>
    %12 = arith.mulf %9, %9 : vector<1x128xf32>
    %13 = arith.subf %11, %12 : vector<1x128xf32>
    %cst_7 = arith.constant 0.000000e+00 : f32
    %14 = vector.broadcast %cst_7 : f32 to vector<1x128xf32>
    %15 = arith.maximumf %13, %14 : vector<1x128xf32>
    %16 = vector.extract_strided_slice %1 {offsets = [9, 0], sizes = [1, 128], strides = [1, 1]} : vector<16x128xf32> to vector<1x128xf32>
    %17 = vector.extract_strided_slice %1 {offsets = [10, 0], sizes = [1, 128], strides = [1, 1]} : vector<16x128xf32> to vector<1x128xf32>
    %cst_8 = arith.constant 9.99999974E-6 : f32
    %18 = vector.broadcast %cst_8 : f32 to vector<1x128xf32>
    %19 = arith.addf %15, %18 : vector<1x128xf32>
    %20 = math.rsqrt %19 : vector<1x128xf32>
    %21 = arith.mulf %16, %20 : vector<1x128xf32>
    %22 = arith.mulf %9, %21 : vector<1x128xf32>
    %23 = arith.subf %17, %22 : vector<1x128xf32>
    %24 = vector.broadcast %21 : vector<1x128xf32> to vector<88x128xf32>
    %25 = arith.mulf %2, %24 : vector<88x128xf32>
    %26 = vector.broadcast %23 : vector<1x128xf32> to vector<88x128xf32>
    %27 = arith.addf %25, %26 : vector<88x128xf32>
    %cst_9 = arith.constant 0.000000e+00 : f32
    %28 = vector.broadcast %cst_9 : f32 to vector<88x128xf32>
    %29 = arith.maximumf %27, %28 : vector<88x128xf32>
    %c0_10 = arith.constant 0 : index
    %c0_11 = arith.constant 0 : index
    %30 = vector.load %arg2[%c0_10, %c0_11] : memref<88x128xf32, #tpu.memory_space<vmem>>, vector<88x128xf32>
    tpu.vector_store %arg2[%c0_10, %c0_11], %29 {strides = array<i32>} : memref<88x128xf32, #tpu.memory_space<vmem>>, vector<88x128xf32>,
    return
  }
}

</mosaic_0001>

<bundles_post_ra>
// kernel: conv_block_forward.1
= control target key start
LH: loop header
LB: loop body
LE: loop exit
PB: predicated region body
PF: predicated region fallthrough
CT: control target
= control target key end

     0   :  { %vm24_vm0 = vcmask 130048   ;;  %s414_s1 = inlined_call_operand.vmem [shape: f32[16,128], index: 1, kind: input, shape index: {}]   ;;  %s415_s0 = inlined_call_operand.vmem [shape: f32[88,16], index: 0, kind: input, shape index: {}]   ;;  %s416_s2 = inlined_call_operand.vmem [shape: f32[88,128], index: 2, kind: output, shape index: {}]  }
   0x1   :  { %v260_v0 = vld [vmem:[%s414_s1 + $0x8] sm:$0xff]  ;;  %v22_v1 = vld [vmem:[%s414_s1] sm:$0xff]  ;;  %v14_v3 = vld [vmem:[%s415_s0 + $0x18] sm:$0xff] }
   0x2   :  { %72 = vmatpush.msra.mxu0 %v260_v0  ;;  %v11_v2 = vld [vmem:[%s415_s0] sm:$0xff]  ;;  %234 = vmatpush.msra.mxu1 %v260_v0  ;;  %v17_v4 = vld [vmem:[%s415_s0 + $0x30] sm:$0xff]  ;;  %v20_v5 = vld [vmem:[%s415_s0 + $0x48] sm:$0xff] }
   0x3   :  { %235 = vmatpush.msra.mxu2 %v260_v0  ;;  %236 = vmatpush.msra.mxu3 %v260_v0  ;;  %v12_v6 = vld [vmem:[%s415_s0 + $0x8] sm:$0xff]  ;;  %v15_v7 = vld [vmem:[%s415_s0 + $0x20] sm:$0xff]  ;;  %v18_v8 = vld [vmem:[%s415_s0 + $0x38] sm:$0xff] }
   0x4   :  { %73 = vmatpush.msra.mxu0 %v22_v1  ;;  %237 = vmatpush.msra.mxu1 %v22_v1  ;;  %v21_v9 = vld [vmem:[%s415_s0 + $0x50] sm:$0xff]  ;;  %v16_v11 = vld [vmem:[%s415_s0 + $0x28] sm:$0xff]  ;;  %v19_v12 = vld [vmem:[%s415_s0 + $0x40] sm:$0xff] }
   0x5   :  { %223 = vmatmul.msk.f32.vlgmr.msra.gmra.mxu0 %vm24_vm0, %v11_v2  ;;  %238 = vmatpush.msra.mxu2 %v22_v1  ;;  %v13_v10 = vld [vmem:[%s415_s0 + $0x10] sm:$0xff] }
   0x6   :  { %226 = vmatmul.msk.f32.vlgmr.msra.gmra.mxu1 %vm24_vm0, %v14_v3  ;;  %229 = vmatmul.msk.f32.vlgmr.msra.gmra.mxu2 %vm24_vm0, %v17_v4 }
   0x7   :  { %239 = vmatpush.msra.mxu3 %v22_v1 }
   0x8   :  { %232 = vmatmul.msk.f32.vlgmr.msra.gmra.mxu3 %vm24_vm0, %v20_v5 }
   0xd   :  { %224 = vmatmul.msk.f32.gmra.mxu0 %vm24_vm0, %v12_v6 }
   0xe   :  { %227 = vmatmul.msk.f32.gmra.mxu1 %vm24_vm0, %v15_v7  ;;  %230 = vmatmul.msk.f32.gmra.mxu2 %vm24_vm0, %v18_v8 }
  0x10   :  { %233 = vmatmul.msk.f32.gmra.mxu3 %vm24_vm0, %v21_v9 }
  0x15   :  { %225 = vmatmul.msk.f32.gmra.mxu0 %vm24_vm0, %v13_v10 }
  0x16   :  { %228 = vmatmul.msk.f32.gmra.mxu1 %vm24_vm0, %v16_v11  ;;  %231 = vmatmul.msk.f32.gmra.mxu2 %vm24_vm0, %v19_v12 }
  0x82   :  { %v313_v13 = vpop.f32.mrf.mxu0 }
  0x83   :  { %v315_v14 = vpop.f32.mrf.mxu1  ;;  %v124_v19 = vmul.f32 %v313_v13, %v313_v13 }
  0x84   :  { %v127_v28 = vmul.f32 %v315_v14, %v315_v14 }
  0x89   :  { %v317_v15 = vpop.f32.mrf.mxu2 }
  0x8a   :  { %v319_v16 = vpop.f32.mrf.mxu0  ;;  %v130_v38 = vmul.f32 %v317_v15, %v317_v15 }
  0x8b   :  { %v321_v17 = vpop.f32.mrf.mxu1  ;;  %v125_v18 = vmul.f32 %v319_v16, %v319_v16  ;;  %v108_v20 = vadd.f32 %v319_v16, %v313_v13  ;;  %v338_v27 = vpop.f32.mrf.mxu3 }
  0x8c   :  { %v128_v31 = vmul.f32 %v321_v17, %v321_v17  ;;  %v133_v48 = vmul.f32 %v338_v27, %v338_v27 }
  0x8d   :  { %v135_v23 = vadd.f32 %v125_v18, %v124_v19 }
  0x91   :  { %v329_v21 = vpop.f32.mrf.mxu2 }
  0x92   :  { %v331_v22 = vpop.f32.mrf.mxu0  ;;  %v131_v41 = vmul.f32 %v329_v21, %v329_v21 }
  0x93   :  { %v109_v24 = vadd.f32 %v108_v20, %v331_v22  ;;  %v126_v25 = vmul.f32 %v331_v22, %v331_v22  ;;  %v336_v26 = vpop.f32.mrf.mxu1  ;;  %v359_v45 = vpop.f32.mrf.mxu3 }
  0x94   :  { %v129_v34 = vmul.f32 %v336_v26, %v336_v26  ;;  %v134_v51 = vmul.f32 %v359_v45, %v359_v45 }
  0x95   :  { %v110_v29 = vadd.f32 %v109_v24, %v315_v14  ;;  %v136_v30 = vadd.f32 %v135_v23, %v126_v25 }
  0x97   :  { %v137_v32 = vadd.f32 %v136_v30, %v127_v28  ;;  %v111_v33 = vadd.f32 %v110_v29, %v321_v17 }
  0x99   :  { %v112_v35 = vadd.f32 %v111_v33, %v336_v26  ;;  %v138_v36 = vadd.f32 %v137_v32, %v128_v31  ;;  %v349_v37 = vpop.f32.mrf.mxu2 }
  0x9a   :  { %v132_v44 = vmul.f32 %v349_v37, %v349_v37 }
  0x9b   :  { %v113_v39 = vadd.f32 %v112_v35, %v317_v15  ;;  %v139_v40 = vadd.f32 %v138_v36, %v129_v34 }
  0x9d   :  { %v140_v42 = vadd.f32 %v139_v40, %v130_v38  ;;  %v114_v43 = vadd.f32 %v113_v39, %v329_v21 }
  0x9f   :  { %v115_v46 = vadd.f32 %v114_v43, %v349_v37  ;;  %v141_v47 = vadd.f32 %v140_v42, %v131_v41 }
  0xa1   :  { %v142_v49 = vadd.f32 %v141_v47, %v132_v44  ;;  %v116_v50 = vadd.f32 %v115_v46, %v338_v27 }
  0xa3   :  { %v117_v52 = vadd.f32 %v116_v50, %v359_v45  ;;  %v143_v53 = vadd.f32 %v142_v49, %v133_v48 }
  0xa5   :  { %v118_v54 = vrot.slane %v117_v52, 4  ;;  %v144_v55 = vadd.f32 %v143_v53, %v134_v51 }
  0xa7   :  { %v119_v56 = vadd.f32 %v118_v54, %v117_v52  ;;  %v145_v57 = vrot.slane %v144_v55, 4 }
  0xa9   :  { %v120_v58 = vrot.slane %v119_v56, 2  ;;  %v146_v59 = vadd.f32 %v145_v57, %v144_v55 }
  0xab   :  { %v121_v60 = vadd.f32 %v120_v58, %v119_v56  ;;  %v147_v61 = vrot.slane %v146_v59, 2 }
  0xad   :  { %v122_v62 = vrot.slane %v121_v60, 1  ;;  %v148_v63 = vadd.f32 %v147_v61, %v146_v59 }
  0xaf   :  { %v123_v1 = vadd.f32 %v122_v62, %v121_v60  ;;  %v149_v2 = vrot.slane %v148_v63, 1 }
  0xb1   :  { %v150_v3 = vadd.f32 %v149_v2, %v148_v63  ;;  %v151_v4 = vmul.f32 0.011904762, %v123_v1 }
  0xb3   :  { %v152_v5 = vmul.f32 0.011904762, %v150_v3  ;;  %v153_v6 = vmul.f32 %v151_v4, %v151_v4 }
  0xb5   :  { %v154_v7 = vsub.f32 %v152_v5, %v153_v6 }
  0xb7   :  { %v155_v8 = vmax.f32 %v154_v7, 0.0 }
  0xb9   :  { %v156_v9 = vadd.f32 1e-05, %v155_v8 }
  0xbb   :  { %240 = vrsqrt.f32 %v156_v9  ;;  %vm163_vm2 = vweird.f32 %v156_v9 }
  0xc1   :  { %v241_v10 = vpop.eup %240 }
  0xc2   :  { %v158_v11 = vmul.f32 %v241_v10, %v156_v9  ;;  %vm164_vm1 = vweird.f32 %v241_v10 }
  0xc3   :  { %vm165_vm3 = vmor %vm163_vm2, %vm164_vm1 }
  0xc4   :  { %v159_v12 = vmul.f32 %v241_v10, %v158_v11 }
  0xc6   :  { %v160_v18 = vmul.f32 0.5, %v159_v12 }
  0xc8   :  { %v161_v19 = vsub.f32 1.5, %v160_v18 }
  0xca   :  { %v162_v20 = vmul.f32 %v241_v10, %v161_v19 }
  0xcc   :  { %v166_v23 = vsel %vm165_vm3, %v241_v10, %v162_v20 }
  0xcd   :  { %v167_v24 = vmul.f32 %v166_v23, %v260_v0 }
  0xcf   :  { %v168_v25 = vmul.f32 %v167_v24, %v151_v4  ;;  %v173_v28 = vperm.slane %v167_v24, 1 }
  0xd1   :  { %v170_v29 = vrot.slane %v168_v25, 7  ;;  %v174_v31 = vmul.f32 %v173_v28, %v313_v13  ;;  %v175_v32 = vmul.f32 %v173_v28, %v319_v16  ;;  %v176_v33 = vmul.f32 %v173_v28, %v331_v22 }
  0xd2   :  { %v177_v34 = vmul.f32 %v173_v28, %v315_v14  ;;  %v178_v36 = vmul.f32 %v173_v28, %v321_v17  ;;  %v179_v38 = vmul.f32 %v173_v28, %v336_v26  ;;  %v180_v39 = vmul.f32 %v173_v28, %v317_v15 }
  0xd3   :  { %v172_v30 = vsub.f32 %v260_v0, %v170_v29  ;;  %v181_v0 = vmul.f32 %v173_v28, %v329_v21  ;;  %v182_v16 = vmul.f32 %v173_v28, %v349_v37  ;;  %v183_v22 = vmul.f32 %v173_v28, %v338_v27 }
  0xd4   :  { %v184_v15 = vmul.f32 %v173_v28, %v359_v45 }
  0xd5   :  { %v185_v35 = vperm.slane %v172_v30, 2 }
  0xd7   :  { %v186_v40 = vadd.f32 %v185_v35, %v174_v31  ;;  %v187_v41 = vadd.f32 %v185_v35, %v175_v32  ;;  %v188_v42 = vadd.f32 %v185_v35, %v176_v33  ;;  %v189_v43 = vadd.f32 %v185_v35, %v177_v34 }
  0xd8   :  { %v190_v13 = vadd.f32 %v185_v35, %v178_v36  ;;  %v191_v44 = vadd.f32 %v185_v35, %v179_v38  ;;  %v192_v14 = vadd.f32 %v185_v35, %v180_v39  ;;  %v193_v47 = vadd.f32 %v185_v35, %v181_v0 }
  0xd9   :  { %v197_v46 = vmax.f32 %v186_v40, 0.0  ;;  %v198_v17 = vmax.f32 %v187_v41, 0.0  ;;  %v199_v48 = vmax.f32 %v188_v42, 0.0  ;;  %v200_v26 = vmax.f32 %v189_v43, 0.0 }
  0xda   :  { %v194_v49 = vadd.f32 %v185_v35, %v182_v16  ;;  %v201_v50 = vmax.f32 %v190_v13, 0.0  ;;  %v195_v21 = vadd.f32 %v185_v35, %v183_v22  ;;  %v202_v51 = vmax.f32 %v191_v44, 0.0 }
  0xdb   :  { %208 = vst [vmem:[%s416_s2] sm:$0xff] %v197_v46  ;;  %v196_v27 = vadd.f32 %v185_v35, %v184_v15  ;;  %v203_v37 = vmax.f32 %v192_v14, 0.0  ;;  %v204_v52 = vmax.f32 %v193_v47, 0.0 }
  0xdc   :  { %209 = vst [vmem:[%s416_s2 + $0x8] sm:$0xff] %v198_v17  ;;  %v205_v45 = vmax.f32 %v194_v49, 0.0  ;;  %v206_v53 = vmax.f32 %v195_v21, 0.0 }
  0xdd   :  { %210 = vst [vmem:[%s416_s2 + $0x10] sm:$0xff] %v199_v48  ;;  %v207_v54 = vmax.f32 %v196_v27, 0.0 }
  0xde   :  { %211 = vst [vmem:[%s416_s2 + $0x18] sm:$0xff] %v200_v26 }
  0xdf   :  { %212 = vst [vmem:[%s416_s2 + $0x20] sm:$0xff] %v201_v50 }
  0xe0   :  { %213 = vst [vmem:[%s416_s2 + $0x28] sm:$0xff] %v202_v51 }
  0xe1   :  { %214 = vst [vmem:[%s416_s2 + $0x30] sm:$0xff] %v203_v37 }
  0xe2   :  { %215 = vst [vmem:[%s416_s2 + $0x38] sm:$0xff] %v204_v52 }
  0xe3   :  { %216 = vst [vmem:[%s416_s2 + $0x40] sm:$0xff] %v205_v45 }
  0xe4   :  { %217 = vst [vmem:[%s416_s2 + $0x48] sm:$0xff] %v206_v53 }
  0xe5   :  { %218 = vst [vmem:[%s416_s2 + $0x50] sm:$0xff] %v207_v54 }

</bundles_post_ra>
